<compile_context>
chip_gen: v6e
topology: v6e:2x2x1
jax: 0.10.0
libtpu: 0.0.40
codegen_flags: <defaults>
</compile_context>

<pallas_src>
import functools

import jax
import jax.numpy as jnp
from jax.experimental import pallas as pl
from jax.experimental.pallas import tpu as pltpu


# A (tile_n, 1) int32 block pads its lane dim to 128 -> 512 bytes per row in
# VMEM (and in the HBM-tiled (N, 1) array).
_LABEL_ROW_BYTES = 512
# Double-buffered inputs (logits + padded labels) target, and the scoped-VMEM
# limit handed to Mosaic.  48 MiB fits v7x's 64 MiB physical VMEM and is well
# under v5e/v6e's 128 MiB.
_INPUT_VMEM_BUDGET = 36 * 1024 * 1024
_VMEM_LIMIT_BYTES = 48 * 1024 * 1024


def _accuracy_kernel(x_ref, y_ref, o_ref, acc_ref, *,
                     n_total: int, tile_n: int, blocks_per_split: int):
    s = pl.program_id(0)          # parallel split (TensorCore shard on v7x)
    i = pl.program_id(1)          # 'arbitrary' reduction step over batch tiles

    @pl.when(i == 0)
    def _():
        acc_ref[...] = jnp.zeros_like(acc_ref)

    x = x_ref[...]                # (tile_n, C) logits, native dtype
    y = y_ref[...]                # (tile_n, 1) int32 labels
    tn, nc = x.shape

    # argmax over the class (lane) axis with PyTorch's "first maximal index"
    # tie-breaking: minimum class index among the maxima.  XLU/VPU work that
    # hides under the logits DMA.
    max_val = jnp.max(x, axis=-1, keepdims=True)                   # (tn, 1)
    class_iota = jax.lax.broadcasted_iota(jnp.int32, (tn, nc), 1)
    cand = jnp.where(x == max_val, class_iota, jnp.int32(nc))
    classes = jnp.min(cand, axis=-1, keepdims=True)                # (tn, 1)

    # Validity mask from the UNCLAMPED block index: masks both the partial
    # tail block and the duplicated block a clamped odd-count split re-reads.
    block_idx = s * blocks_per_split + i
    row_ids = block_idx * tile_n + jax.lax.broadcasted_iota(jnp.int32, (tn, 1), 0)
    valid = row_ids < n_total

    correct = (valid & (classes == y)).astype(jnp.int32)           # (tn, 1)
    acc_ref[...] += jnp.sum(correct, axis=0, keepdims=True)        # (1, 1)

    @pl.when(i == pl.num_programs(1) - 1)
    def _():
        # Write this split's partial count once, padded to a (1,8,128) block.
        o_ref[...] = jnp.broadcast_to(acc_ref[...], o_ref.shape)


def _min_rows_for_dtype(itemsize: int) -> int:
    # Sublane tile: 8 rows for 32-bit, 16 for 16-bit, 32 for 8-bit dtypes.
    return max(8, 32 // max(1, itemsize))


def _choose_tile_n(n_rows: int, n_classes: int, itemsize: int, min_rows: int) -> int:
    # Double-buffered logits block + double-buffered padded label block.
    per_row = 2 * (n_classes * itemsize + _LABEL_ROW_BYTES)
    max_rows = max(min_rows, _INPUT_VMEM_BUDGET // per_row)
    max_rows -= max_rows % min_rows
    max_rows = max(max_rows, min_rows)
    return n_rows if n_rows <= max_rows else max_rows


def accuracy(inputs, labels, reduction: str = "mean", tile_n=None):
    """inputs: (N, C) float logits (f32 or bf16); labels: (N,) integer ids."""
    n, c = inputs.shape
    labels_2d = labels.astype(jnp.int32).reshape(n, 1)

    itemsize = jnp.dtype(inputs.dtype).itemsize
    min_rows = _min_rows_for_dtype(itemsize)
    if tile_n is None:
        tile_n = _choose_tile_n(n, c, itemsize, min_rows)
    else:
        tile_n = min(int(tile_n), n)
        if tile_n != n and tile_n % min_rows != 0:
            tile_n = max(min_rows, (tile_n // min_rows) * min_rows)

    nb = pl.cdiv(n, tile_n)                       # total batch blocks
    splits = 2 if nb >= 2 else 1                  # always use both TCs on v7x
    bps = pl.cdiv(nb, splits)                     # blocks per split

    def _block_map(s, i):
        # Clamp so the DMA never walks past the last (possibly partial) block;
        # the kernel masks duplicated work via the unclamped index.
        return (jnp.minimum(s * bps + i, nb - 1), 0)

    kernel = functools.partial(
        _accuracy_kernel, n_total=n, tile_n=tile_n, blocks_per_split=bps)

    cost = pl.CostEstimate(
        flops=3 * n * c,
        transcendentals=0,
        bytes_accessed=n * c * itemsize + n * _LABEL_ROW_BYTES + splits * 8 * 128 * 4)

    partials = pl.pallas_call(
        kernel,
        out_shape=jax.ShapeDtypeStruct((splits, 8, 128), jnp.int32),
        grid=(splits, bps),
        in_specs=[
            pl.BlockSpec((tile_n, c), _block_map),
            pl.BlockSpec((tile_n, 1), _block_map),
        ],
        out_specs=pl.BlockSpec((1, 8, 128), lambda s, i: (s, 0, 0)),
        scratch_shapes=[pltpu.VMEM((1, 1), jnp.int32)],
        compiler_params=pltpu.CompilerParams(
            dimension_semantics=("parallel", "arbitrary"),
            vmem_limit_bytes=_VMEM_LIMIT_BYTES),
        cost_estimate=cost,
    )(inputs, labels_2d)

    total = jnp.sum(partials[:, 0, 0]).astype(jnp.float32)
    if reduction == "mean":
        return total / jnp.float32(n)
    return total


def _ref_accuracy(logits, labels, reduction):
    classes = jnp.argmax(logits, axis=1)
    correct = (classes == labels).astype(jnp.float32)
    return jnp.mean(correct) if reduction == "mean" else jnp.sum(correct)


if __name__ == "__main__":
    key = jax.random.PRNGKey(0)
    ks = jax.random.split(key, 8)

    # Case 1: small single-block case (typical module usage).
    N, C = 8, 32
    logits = jax.random.normal(ks[0], (N, C), dtype=jnp.float32)
    labels = jax.random.randint(ks[1], (N,), 0, C, dtype=jnp.int32)
    acc_mean = accuracy(logits, labels, reduction="mean")
    acc_sum = accuracy(logits, labels, reduction="sum")

    # Case 2: N not a multiple of tile_n AND an odd block count ->
    # exercises tail-row masking plus the clamped duplicate block on split 1.
    N2, C2 = 20, 32
    logits2 = jax.random.normal(ks[2], (N2, C2), dtype=jnp.float32)
    labels2 = jax.random.randint(ks[3], (N2,), 0, C2, dtype=jnp.int32)
    acc2 = accuracy(logits2, labels2, reduction="mean", tile_n=8)

    # Case 3: even block count -> clean 2-way 'parallel' split.
    N3, C3 = 32, 32
    logits3 = jax.random.normal(ks[4], (N3, C3), dtype=jnp.float32)
    labels3 = jax.random.randint(ks[5], (N3,), 0, C3, dtype=jnp.int32)
    acc3 = accuracy(logits3, labels3, reduction="sum", tile_n=8)

    # Case 4: tie-breaking (all-equal logits -> argmax == 0 everywhere).
    logits4 = jnp.zeros((N, C), dtype=jnp.float32)
    labels4 = jnp.arange(N, dtype=jnp.int32) % 2     # half the labels are 0
    acc4 = accuracy(logits4, labels4, reduction="mean")

    # Case 5: bf16 logits -> native-dtype streaming, 16-row sublane tiles.
    N5, C5 = 32, 16
    logits5 = jax.random.normal(ks[6], (N5, C5), dtype=jnp.float32).astype(jnp.bfloat16)
    labels5 = jax.random.randint(ks[7], (N5,), 0, C5, dtype=jnp.int32)
    acc5 = accuracy(logits5, labels5, reduction="mean", tile_n=16)

    results = (acc_mean, acc_sum, acc2, acc3, acc4, acc5)
    jax.block_until_ready(results)

    assert jnp.allclose(acc_mean, _ref_accuracy(logits, labels, "mean")), acc_mean
    assert jnp.allclose(acc_sum, _ref_accuracy(logits, labels, "sum")), acc_sum
    assert jnp.allclose(acc2, _ref_accuracy(logits2, labels2, "mean")), acc2
    assert jnp.allclose(acc3, _ref_accuracy(logits3, labels3, "sum")), acc3
    assert jnp.allclose(acc4, jnp.float32(0.5)), acc4
    assert jnp.allclose(acc5, _ref_accuracy(logits5, labels5, "mean")), acc5

    print("KERNEL_OK")
</pallas_src>

<mosaic_0001>
module attributes {stable_mosaic.version = 11 : i64} {
  func.func @_accuracy_kernel(%arg0: i32, %arg1: i32, %arg2: memref<8x32xf32, #tpu.memory_space<vmem>>, %arg3: memref<8x1xi32, #tpu.memory_space<vmem>>, %arg4: memref<1x8x128xi32, #tpu.memory_space<vmem>>, %arg5: memref<1x1xi32, #tpu.memory_space<vmem>>) attributes {dimension_semantics = [#tpu.dimension_semantics<parallel>, #tpu.dimension_semantics<arbitrary>], iteration_bounds = array<i64: 1, 1>, scalar_prefetch = 0 : i64, scratch_operands = 1 : i64, tpu.core_type = #tpu.core_type<tc>, window_params = [{transform_indices = @transform_0, window_bounds = array<i64: 8, 32>}, {transform_indices = @transform_1, window_bounds = array<i64: 8, 1>}, {transform_indices = @transform_2, window_bounds = array<i64: 1, 8, 128>}]} {
    %c0_i32 = arith.constant 0 : i32
    %0 = arith.cmpi eq, %arg1, %c0_i32 : i32
    %1 = arith.extui %0 : i1 to i32
    %c0_i32_0 = arith.constant 0 : i32
    %2 = arith.cmpi ne, %1, %c0_i32_0 : i32
    scf.if %2 {
      %c0_i32_13 = arith.constant 0 : i32
      %33 = vector.broadcast %c0_i32_13 : i32 to vector<1x1xi32>
      %c0_14 = arith.constant 0 : index
      %c0_15 = arith.constant 0 : index
      %34 = vector.load %arg5[%c0_14, %c0_15] : memref<1x1xi32, #tpu.memory_space<vmem>>, vector<1x1xi32>
      tpu.vector_store %arg5[%c0_14, %c0_15], %33 {strides = array<i32>} : memref<1x1xi32, #tpu.memory_space<vmem>>, vector<1x1xi32>,
    } else {
    }
    %c0 = arith.constant 0 : index
    %c0_1 = arith.constant 0 : index
    %3 = vector.load %arg2[%c0, %c0_1] : memref<8x32xf32, #tpu.memory_space<vmem>>, vector<8x32xf32>
    %c0_2 = arith.constant 0 : index
    %c0_3 = arith.constant 0 : index
    %4 = vector.load %arg3[%c0_2, %c0_3] : memref<8x1xi32, #tpu.memory_space<vmem>>, vector<8x1xi32>
    %cst = arith.constant dense<0xFF800000> : vector<8xf32>
    %5 = vector.multi_reduction <maximumf>, %3, %cst [1] : vector<8x32xf32> to vector<8xf32>
    %6 = vector.shape_cast %5 : vector<8xf32> to vector<8x1xf32>
    %7 = tpu.iota {dimensions = array<i32: 1>} : vector<8x32xi32>
    %8 = vector.broadcast %6 : vector<8x1xf32> to vector<8x32xf32>
    %9 = arith.cmpf oeq, %3, %8 : vector<8x32xf32>
    %c32_i32 = arith.constant 32 : i32
    %10 = vector.broadcast %c32_i32 : i32 to vector<8x32xi32>
    %11 = arith.select %9, %7, %10 : vector<8x32xi1>, vector<8x32xi32>
    %cst_4 = arith.constant dense<2147483647> : vector<8xi32>
    %12 = vector.multi_reduction <minsi>, %11, %cst_4 [1] : vector<8x32xi32> to vector<8xi32>
    %13 = vector.shape_cast %12 : vector<8xi32> to vector<8x1xi32>
    %c1_i32 = arith.constant 1 : i32
    %14 = arith.muli %arg0, %c1_i32 : i32
    %15 = arith.addi %14, %arg1 : i32
    %c8_i32 = arith.constant 8 : i32
    %16 = arith.muli %15, %c8_i32 : i32
    %17 = tpu.iota {dimensions = array<i32: 0>} : vector<8x1xi32>
    %18 = vector.broadcast %16 : i32 to vector<8x1xi32>
    %19 = arith.addi %18, %17 : vector<8x1xi32>
    %c8_i32_5 = arith.constant 8 : i32
    %20 = vector.broadcast %c8_i32_5 : i32 to vector<8x1xi32>
    %21 = arith.cmpi slt, %19, %20 : vector<8x1xi32>
    %22 = arith.cmpi eq, %13, %4 : vector<8x1xi32>
    %23 = arith.andi %21, %22 : vector<8x1xi1>
    %24 = arith.extui %23 : vector<8x1xi1> to vector<8x1xi32>
    %c0_6 = arith.constant 0 : index
    %c0_7 = arith.constant 0 : index
    %25 = vector.load %arg5[%c0_6, %c0_7] : memref<1x1xi32, #tpu.memory_space<vmem>>, vector<1x1xi32>
    %cst_8 = arith.constant dense<0> : vector<1xi32>
    %26 = vector.multi_reduction <add>, %24, %cst_8 [0] : vector<8x1xi32> to vector<1xi32>
    %27 = vector.shape_cast %26 : vector<1xi32> to vector<1x1xi32>
    %28 = arith.addi %25, %27 : vector<1x1xi32>
    %c0_9 = arith.constant 0 : index
    %c0_10 = arith.constant 0 : index
    %29 = vector.load %arg5[%c0_9, %c0_10] : memref<1x1xi32, #tpu.memory_space<vmem>>, vector<1x1xi32>
    tpu.vector_store %arg5[%c0_9, %c0_10], %28 {strides = array<i32>} : memref<1x1xi32, #tpu.memory_space<vmem>>, vector<1x1xi32>,
    %c0_i32_11 = arith.constant 0 : i32
    %30 = arith.cmpi eq, %arg1, %c0_i32_11 : i32
    %31 = arith.extui %30 : i1 to i32
    %c0_i32_12 = arith.constant 0 : i32
    %32 = arith.cmpi ne, %31, %c0_i32_12 : i32
    scf.if %32 {
      %c0_13 = arith.constant 0 : index
      %c0_14 = arith.constant 0 : index
      %33 = vector.load %arg5[%c0_13, %c0_14] : memref<1x1xi32, #tpu.memory_space<vmem>>, vector<1x1xi32>
      %34 = vector.shape_cast %33 : vector<1x1xi32> to vector<1x1x1xi32>
      %35 = vector.broadcast %34 : vector<1x1x1xi32> to vector<1x8x128xi32>
      %c0_15 = arith.constant 0 : index
      %c0_16 = arith.constant 0 : index
      %c0_17 = arith.constant 0 : index
      %36 = vector.load %arg4[%c0_15, %c0_16, %c0_17] : memref<1x8x128xi32, #tpu.memory_space<vmem>>, vector<1x8x128xi32>
      tpu.vector_store %arg4[%c0_15, %c0_16, %c0_17], %35 {strides = array<i32>} : memref<1x8x128xi32, #tpu.memory_space<vmem>>, vector<1x8x128xi32>,
    } else {
    }
    return
  }
  func.func @transform_0(%arg0: i32, %arg1: i32) -> (i32, i32) {
    %c1_i32 = arith.constant 1 : i32
    %0 = arith.muli %arg0, %c1_i32 : i32
    %1 = arith.addi %0, %arg1 : i32
    %c0_i32 = arith.constant 0 : i32
    %2 = arith.minsi %1, %c0_i32 : i32
    %c0_i32_0 = arith.constant 0 : i32
    %c0_i32_1 = arith.constant 0 : i32
    return %2, %c0_i32_0 : i32, i32
  }
  func.func @transform_1(%arg0: i32, %arg1: i32) -> (i32, i32) {
    %c1_i32 = arith.constant 1 : i32
    %0 = arith.muli %arg0, %c1_i32 : i32
    %1 = arith.addi %0, %arg1 : i32
    %c0_i32 = arith.constant 0 : i32
    %2 = arith.minsi %1, %c0_i32 : i32
    %c0_i32_0 = arith.constant 0 : i32
    %c0_i32_1 = arith.constant 0 : i32
    return %2, %c0_i32_0 : i32, i32
  }
  func.func @transform_2(%arg0: i32, %arg1: i32) -> (i32, i32, i32) {
    %c0_i32 = arith.constant 0 : i32
    %c0_i32_0 = arith.constant 0 : i32
    %c0_i32_1 = arith.constant 0 : i32
    return %arg0, %c0_i32, %c0_i32_0 : i32, i32, i32
  }
}

</mosaic_0001>

<bundles_post_ra>
// kernel: tpu_custom_call.1
= control target key start
LH: loop header
LB: loop body
LE: loop exit
PB: predicated region body
PF: predicated region fallthrough
CT: control target
= control target key end

     0   :  { %vm74_vm0 = vcmask 261120   ;;  %s212_s0 = inlined_call_operand.vmem [shape: f32[8,32], index: 0, kind: input, shape index: {}]   ;;  %s213_s1 = inlined_call_operand.vmem [shape: s32[8,1], index: 1, kind: input, shape index: {}]   ;;  %s214_s2 = inlined_call_operand.hbm [shape: s32[1,8,128], index: 2, kind: output, shape index: {}]  }
   0x1   :  { %v72_v0 = vld [vmem:[%s212_s0] sm:$0xff] }
   0x2   :  { %7 = vsyncpa [#allocation4], 0  ;;  %v75_v1 = vsel %vm74_vm0, %v72_v0, -inf  ;;  %v78_v2 = vlaneseq  ;;  %vm70_vm3 = vcmask 0   ;;  %v184_v13 = vmov 0   ;;  %v73_v18 = vld [vmem:[%s213_s1] sm:$0xff] }
   0x3   :  { %76 = vmax.xlane.f32.xlu0 %v75_v1  ;;  %160 = vset.pattern.permute.xlu1 %v184_v13  ;;  %71 = vst.msk [vmem:[#allocation2] sm:$0x1] %vm70_vm3, %v184_v13  ;;  %vm108_vm4 = vcmask 7168   ;;  %s185_s12 = smov [#allocation3]  }
   0x4   :  { %v79_v3 = vand.u32 127, %v78_v2  ;;  %161 = vset.pattern.permute.xlu0 %v184_v13  ;;  %s137_s13 = sshll.u32 %s185_s12, 4  ;;  %s138_s13 = int_to_ptr.vmem [resolvable:$true] %s137_s13 }
   0x5   :  { %s162_s1 = scalar_lea.vmem %s138_s13, 128  ;;  %p167_p1 = scmp.lt.s32.totalorder %s138_s13, %s138_s13 }
   0x6   :  { %p163_p0 = scmp.ne.s32.totalorder %s138_s13, %s162_s1  ;;  %p168_p2 = scmp.lt.s32.totalorder %s162_s1, %s162_s1 }
   0x8   :  { %p169_p3 = por %p168_p2, %p167_p1 }
   0xa   :  { %v107_v27 = vld [vmem:[#allocation2] sm:$0x1]  ;;  %p170_p4 = pnand %p169_p3, %p163_p0 }
  0x8c   :  { %v77_v4 = vpop.xlane.xlu0 %76 }
  0x8d   :  { %vm80_vm1 = vcmp.eq.f32.partialorder %v72_v0, %v77_v4 }
  0x8e   :  { %v81_v5 = vsel %vm80_vm1, %v79_v3, 32 }
  0x8f   :  { %v82_v6 = vsel %vm74_vm0, %v81_v5, 2147483647 }
  0x90   :  { %v84_v7 = vshra.s32 %v82_v6, 16  ;;  %v83_v9 = vand.u32 65535, %v82_v6 }
  0x92   :  { %v86_v8 = vcvt.s32.f32 %v84_v7  ;;  %v85_v11 = vcvt.s32.f32 %v83_v9 }
  0x94   :  { %87 = vmin.xlane.f32.xlu0 %v86_v8 }
 0x11d   :  { %v88_v10 = vpop.xlane.xlu0 %87 }
 0x11e   :  { %vm89_vm2 = vcmp.eq.f32.partialorder %v86_v8, %v88_v10  ;;  %v94_v14 = vcvt.f32.s32 %v88_v10 }
 0x11f   :  { %v90_v12 = vsel %vm89_vm2, %v85_v11, inf }
 0x120   :  { %91 = vmin.xlane.f32.xlu1 %v90_v12  ;;  %v95_v16 = vshll.u32 %v94_v14, 16 }
 0x1a9   :  { %v92_v15 = vpop.xlane.xlu1 %91 }
 0x1aa   :  { %v93_v17 = vcvt.f32.s32 %v92_v15 }
 0x1ac   :  { %v96_v19 = vadd.s32 %v95_v16, %v93_v17 }
 0x1ae   :  { %vm104_vm5 = vcmp.eq.s32.totalorder %v96_v19, %v73_v18 }
 0x1af   :  { %v106_v20 = vsel %vm104_vm5, 1, %v184_v13 }
 0x1b0   :  { %v109_v21 = vsel %vm108_vm4, %v106_v20, 0 }
 0x1b1   :  { %v110_v22 = vrot.slane %v109_v21, 4 }
 0x1b3   :  { %v111_v23 = vadd.s32 %v110_v22, %v109_v21 }
 0x1b5   :  { %v112_v24 = vrot.slane %v111_v23, 2 }
 0x1b7   :  { %v113_v25 = vadd.s32 %v112_v24, %v111_v23 }
 0x1b9   :  { %v114_v26 = vrot.slane %v113_v25, 1 }
 0x1bb   :  { %v115_v28 = vadd.s32 %v114_v26, %v113_v25 }
 0x1bd   :  { %v116_v29 = vadd.s32 %v115_v28, %v107_v27 }
 0x1bf   :  { %118 = vst.msk [vmem:[#allocation2] sm:$0x1] %vm70_vm3, %v116_v29 }
 0x1c6   :  { %v157_v30 = vld [vmem:[#allocation2] ss:$0 sm:$0xff] }
 0x1c7   :  { %128 = vperm.xlu1 %160, %v157_v30  }
 0x242   :  { %v129_v31 = vpop.permute.xlu1 %128 }
 0x243   :  { %130 = vst [vmem:[#allocation3] sm:$0xff] %v129_v31 }
 0x244   :  { %173 = shalt.err (!%p170_p4)
}
 0x245   :  { %140 = dma.vmem_to_hbm [thread:$0]  %s138_s13, 128, %s214_s2, [#allocation4]  }
 0x246   :  { %182 = dma.done.wait [#allocation4], 128  }
 0x247   :  { %183 = vsyncadd [#allocation4], 4294967168 }
 0x248   :  { %144 = vsyncpa [#allocation4], 1 }

</bundles_post_ra>
